<compile_context>
chip_gen: v6e
topology: v6e:2x2x1
jax: 0.10.0
libtpu: 0.0.40
codegen_flags: <defaults>
</compile_context>

<pallas_src>
import math

import jax
import jax.numpy as jnp
from jax.experimental import pallas as pl
from jax.experimental.pallas import tpu as pltpu

_LANE = 128            # TPU lane width (last dim of a vreg)
# 3 MiB per block -> <= 12 MiB double-buffered in+out, safely inside every
# generation's scoped-VMEM default (16 MiB v5e, 32 MiB v6e/v7x).
_BLOCK_CAP_BYTES = 3 << 20


def _copy_kernel(x_ref, o_ref):
    # Full-tile load / store; one block per grid step.
    o_ref[...] = x_ref[...]


def _sublane_granule(dtype) -> int:
    # f32 -> 8 sublanes, bf16/f16 -> 16, int8/fp8 -> 32 (sub-32-bit dtypes
    # pack along the sublane axis; keep blocks on native-tile boundaries).
    return max(8, 32 // jnp.dtype(dtype).itemsize)


def _lane_dense_copy(x2d: jax.Array) -> jax.Array:
    """Tiled copy of a [rows, 128] slab (rows need not be a multiple of 8)."""
    rows, _ = x2d.shape
    itemsize = jnp.dtype(x2d.dtype).itemsize
    granule = _sublane_granule(x2d.dtype)
    cap_rows = max(granule,
                   (_BLOCK_CAP_BYTES // (_LANE * itemsize)) // granule * granule)

    if rows <= cap_rows:
        # Single block equal to the full array: always a legal block shape,
        # grid=(1,), zero extra per-step overhead for KiB-scale inputs.
        block_rows = rows
    else:
        # Sublane-aligned 3 MiB blocks; Pallas masks the partial edge block.
        block_rows = cap_rows

    grid = pl.cdiv(rows, block_rows)
    return pl.pallas_call(
        _copy_kernel,
        out_shape=jax.ShapeDtypeStruct(x2d.shape, x2d.dtype),
        grid=(grid,),
        in_specs=[pl.BlockSpec((block_rows, _LANE), lambda i: (i, 0))],
        out_specs=pl.BlockSpec((block_rows, _LANE), lambda i: (i, 0)),
        compiler_params=pltpu.CompilerParams(
            dimension_semantics=("parallel",),
        ),
    )(x2d)


def _ragged_copy(x: jax.Array) -> jax.Array:
    """Copy when numel % 128 != 0: original layout, tile the leading axis only.

    Trailing block dims equal the full array dims (always legal); partial-lane
    stores are masked but there is still exactly one HBM read + one write.
    """
    orig_shape = x.shape
    if x.ndim < 2:
        x = x.reshape(1, -1)

    lead = x.shape[0]
    rest = x.shape[1:]
    itemsize = jnp.dtype(x.dtype).itemsize
    rest_bytes = max(1, math.prod(rest)) * itemsize

    if lead * rest_bytes <= _BLOCK_CAP_BYTES:
        chunk = lead                        # single full-array block
    else:
        chunk = max(1, _BLOCK_CAP_BYTES // rest_bytes)
        if x.ndim == 2:
            # chunk lands in the second-to-last block dim: keep it on the
            # native sublane granule.
            g = _sublane_granule(x.dtype)
            chunk = max(g, chunk // g * g)

    grid = pl.cdiv(lead, chunk)
    n_rest = len(rest)
    block = (chunk,) + rest
    out = pl.pallas_call(
        _copy_kernel,
        out_shape=jax.ShapeDtypeStruct(x.shape, x.dtype),
        grid=(grid,),
        in_specs=[pl.BlockSpec(block, lambda i, n=n_rest: (i,) + (0,) * n)],
        out_specs=pl.BlockSpec(block, lambda i, n=n_rest: (i,) + (0,) * n),
        compiler_params=pltpu.CompilerParams(
            dimension_semantics=("parallel",),
        ),
    )(x)
    return out.reshape(orig_shape)


def base_ae_forward(x: jax.Array, *, materialize: bool = True) -> jax.Array:
    """BaseAE.forward: identity pass-through of the NCHW input.

    materialize=False returns x unchanged (zero HBM traffic — the true upper
    bound for a pass-through).  materialize=True (default, so the Pallas
    kernel is exercised) streams x through a tiled HBM->VMEM->HBM copy.
    """
    if not materialize:
        return x

    total = math.prod(x.shape) if x.shape else 1
    if total == 0:
        return x

    if total % _LANE == 0:
        # Lane-dense path: pure reshape (no pad), every load/store is an
        # unmasked full-lane vld/vst regardless of H*W.
        out2d = _lane_dense_copy(x.reshape(total // _LANE, _LANE))
        return out2d.reshape(x.shape)

    return _ragged_copy(x)


if __name__ == "__main__":
    key = jax.random.PRNGKey(0)

    # Small NCHW input consistent with a conv-style autoencoder interface.
    x = jax.random.normal(key, (2, 4, 16, 16), dtype=jnp.float32)
    y = base_ae_forward(x)
    jax.block_until_ready(y)
    assert y.shape == x.shape and y.dtype == x.dtype
    assert bool(jnp.allclose(y, x)), "pass-through mismatch (lane-dense path)"

    # Ragged shape (numel % 128 != 0) exercises the no-pad fallback path.
    x2 = jax.random.normal(key, (3, 5, 7, 7), dtype=jnp.float32)
    y2 = base_ae_forward(x2)
    jax.block_until_ready(y2)
    assert y2.shape == x2.shape and y2.dtype == x2.dtype
    assert bool(jnp.allclose(y2, x2)), "pass-through mismatch (ragged path)"

    print("KERNEL_OK")
</pallas_src>

<mosaic_0001>
module attributes {stable_mosaic.version = 11 : i64} {
  func.func @_copy_kernel(%arg0: i32, %arg1: memref<16x128xf32, #tpu.memory_space<vmem>>, %arg2: memref<16x128xf32, #tpu.memory_space<vmem>>) attributes {dimension_semantics = [#tpu.dimension_semantics<parallel>], iteration_bounds = array<i64: 1>, scalar_prefetch = 0 : i64, scratch_operands = 0 : i64, tpu.core_type = #tpu.core_type<tc>, window_params = [{transform_indices = @transform_0, window_bounds = array<i64: 16, 128>}, {transform_indices = @transform_1, window_bounds = array<i64: 16, 128>}]} {
    %c0 = arith.constant 0 : index
    %c0_0 = arith.constant 0 : index
    %0 = vector.load %arg1[%c0, %c0_0] : memref<16x128xf32, #tpu.memory_space<vmem>>, vector<16x128xf32>
    %c0_1 = arith.constant 0 : index
    %c0_2 = arith.constant 0 : index
    %1 = vector.load %arg2[%c0_1, %c0_2] : memref<16x128xf32, #tpu.memory_space<vmem>>, vector<16x128xf32>
    tpu.vector_store %arg2[%c0_1, %c0_2], %0 {strides = array<i32>} : memref<16x128xf32, #tpu.memory_space<vmem>>, vector<16x128xf32>,
    return
  }
  func.func @transform_0(%arg0: i32) -> (i32, i32) {
    %c0_i32 = arith.constant 0 : i32
    %c0_i32_0 = arith.constant 0 : i32
    return %arg0, %c0_i32 : i32, i32
  }
  func.func @transform_1(%arg0: i32) -> (i32, i32) {
    %c0_i32 = arith.constant 0 : i32
    %c0_i32_0 = arith.constant 0 : i32
    return %arg0, %c0_i32 : i32, i32
  }
}

</mosaic_0001>

<bundles_post_ra>
// kernel: tpu_custom_call.1
= control target key start
LH: loop header
LB: loop body
LE: loop exit
PB: predicated region body
PF: predicated region fallthrough
CT: control target
= control target key end

     0   :  { %6 = vsyncpa [#allocation3], 0  ;;  %s112_s0 = inlined_call_operand.hbm [shape: f32[16,128], index: 0, kind: input, shape index: {}]   ;;  %s113_s1 = inlined_call_operand.hbm [shape: f32[16,128], index: 1, kind: output, shape index: {}]  }
   0x1   :  { %7 = vsyncpa [#allocation4], 0  ;;  %s92_s6 = smov [#allocation2]  }
   0x2   :  { %s13_s7 = sshll.u32 %s92_s6, 4  ;;  %s14_s7 = int_to_ptr.vmem [resolvable:$true] %s13_s7 }
   0x3   :  { %s56_s8 = scalar_lea.vmem %s14_s7, 256  ;;  %p61_p1 = scmp.lt.s32.totalorder %s14_s7, %s14_s7 }
   0x4   :  { %p57_p0 = scmp.ne.s32.totalorder %s14_s7, %s56_s8  ;;  %p62_p2 = scmp.lt.s32.totalorder %s56_s8, %s56_s8 }
   0x6   :  { %p63_p3 = por %p62_p2, %p61_p1 }
   0x8   :  { %p64_p4 = pnand %p63_p3, %p57_p0 }
   0xa   :  { %67 = shalt.err (!%p64_p4)
}
   0xb   :  { %s93_s9 = smov 128   ;;  %s94_s10 = smov 8  }
   0xc   :  { %19 = dma.hbm_to_vmem [thread:$0]  %s112_s0, 256, %s14_s7, [#allocation3], %s93_s9, %s93_s9, %s94_s10  }
   0xd   :  { %88 = dma.done.wait [#allocation3], 256  }
   0xe   :  { %89 = vsyncadd [#allocation3], 4294967040  ;;  %s95_s13 = smov [#allocation5]   ;;  %v23_v0 = vld [vmem:[#allocation2] sm:$0xff]  ;;  %v24_v1 = vld [vmem:[#allocation2 + $0x8] sm:$0xff] }
   0xf   :  { %s32_s14 = sshll.u32 %s95_s13, 4  ;;  %25 = vst [vmem:[#allocation5] sm:$0xff] %v23_v0  ;;  %26 = vst [vmem:[#allocation5 + $0x8] sm:$0xff] %v24_v1  ;;  %s33_s14 = int_to_ptr.vmem [resolvable:$true] %s32_s14 }
  0x10   :  { %s68_s15 = scalar_lea.vmem %s33_s14, 256  ;;  %p73_p6 = scmp.lt.s32.totalorder %s33_s14, %s33_s14 }
  0x11   :  { %p69_p5 = scmp.ne.s32.totalorder %s33_s14, %s68_s15  ;;  %p74_p7 = scmp.lt.s32.totalorder %s68_s15, %s68_s15 }
  0x13   :  { %p75_p8 = por %p74_p7, %p73_p6 }
  0x15   :  { %p76_p9 = pnand %p75_p8, %p69_p5 }
  0x17   :  { %79 = shalt.err (!%p76_p9)
}
  0x18   :  { %38 = dma.vmem_to_hbm [thread:$0]  %s33_s14, 256, %s113_s1, [#allocation4], %s93_s9, %s93_s9, %s94_s10  }
  0x19   :  { %90 = dma.done.wait [#allocation4], 256  }
  0x1a   :  { %91 = vsyncadd [#allocation4], 4294967040 }
  0x1b   :  { %42 = vsyncpa [#allocation3], 1 }
  0x1c   :  { %43 = vsyncpa [#allocation4], 1 }

</bundles_post_ra>
